<compile_context>
chip_gen: v7x
topology: tpu7x:2x2x1
jax: 0.10.0
libtpu: 0.0.40
codegen_flags: <defaults>
</compile_context>

<pallas_src>
import functools

import jax
import jax.numpy as jnp
from jax.experimental import pallas as pl
from jax.experimental.pallas import tpu as pltpu

_LANE = 128
_SUBLANE = 8


def _round_up(v, m):
    return ((v + m - 1) // m) * m


def _fused_mlp_kernel(x_ref, w_ref, b_ref, o_ref, *, layer_dims):
    """x_ref: (TM, K0_pad) f32;  w_ref: (L, Kmax, Nmax) bf16;
    b_ref: (L, 1, Nmax) f32;  o_ref: (TM, Nlast_pad) f32.
    layer_dims: static tuple of (k_pad, n_pad) per layer."""
    act = x_ref[...].astype(jnp.float32)
    n_layers = len(layer_dims)
    # Static unroll: fine for small L.  TODO(synk): switch to lax.fori_loop
    # with dynamic w_ref[layer] indexing if num_layers ever gets large.
    for layer, (k_pad, n_pad) in enumerate(layer_dims):
        w16 = w_ref[layer, :k_pad, :n_pad]               # bf16 live slice
        y = jnp.dot(act[:, :k_pad].astype(jnp.bfloat16), w16,
                    preferred_element_type=jnp.float32)   # f32 MXU accumulate
        y = y + b_ref[layer, :, :n_pad]                   # f32 bias
        if layer < n_layers - 1:
            y = jnp.maximum(y, 0.0)                       # ReLU (not on last)
        act = y
    o_ref[...] = act.astype(o_ref.dtype)


def init_mlp_params(key, input_dim, hidden_dim, output_dim, num_layers):
    """Parameter init matching the PyTorch module's layer shapes.
    PyTorch Linear weight is (out, in); we store the transpose (in, out)."""
    h = [hidden_dim] * (num_layers - 1)
    dims_in = [input_dim] + h
    dims_out = h + [output_dim]
    params = []
    for n, k in zip(dims_in, dims_out):
        key, kw, kb = jax.random.split(key, 3)
        bound = 1.0 / jnp.sqrt(n)
        w_t = jax.random.uniform(kw, (n, k), jnp.float32, -bound, bound)
        b = jax.random.uniform(kb, (k,), jnp.float32, -bound, bound)
        params.append((w_t, b))
    return params


def prepare_mlp_params(params):
    """One-time packing of the layer list into kernel-ready stacks.
    Hoisted out of the per-call forward path (perf review item #1)."""
    in_dims = [w.shape[0] for (w, _) in params]
    out_dims = [w.shape[1] for (w, _) in params]
    k_pads = [_round_up(d, _LANE) for d in in_dims]
    n_pads = [_round_up(d, _LANE) for d in out_dims]
    kmax, nmax = max(k_pads), max(n_pads)

    # Zero padding is mathematically exact: padded weight rows/cols and bias
    # entries are zero and ReLU(0)=0, so padded activation columns stay zero.
    w_stack = jnp.stack([
        jnp.pad(w, ((0, kmax - w.shape[0]), (0, nmax - w.shape[1])))
        for (w, _) in params
    ]).astype(jnp.bfloat16)                                # MXU operand dtype
    b_stack = jnp.stack([
        jnp.pad(b, (0, nmax - b.shape[0])).reshape(1, nmax)
        for (_, b) in params
    ]).astype(jnp.float32)                                 # bias stays f32

    meta = dict(
        layer_dims=tuple(zip(k_pads, n_pads)),
        true_layer_dims=tuple(zip(in_dims, out_dims)),
        in_dim=in_dims[0],
        out_dim=out_dims[-1],
    )
    return w_stack, b_stack, meta


def mlp_forward(x, w_stack, b_stack, meta):
    """Forward pass: ReLU on all layers except the last (matches the module)."""
    layer_dims = meta["layer_dims"]
    in_dim = meta["in_dim"]
    out_dim = meta["out_dim"]
    lead_shape = x.shape[:-1]

    x2d = x.reshape(-1, in_dim)
    M = x2d.shape[0]
    in_pad = layer_dims[0][0]
    out_pad = layer_dims[-1][1]
    num_layers, kmax, nmax = w_stack.shape

    # Row tile: large cap (1024) so big problems amortize per-grid-step
    # overhead; small problems collapse to a single tile.
    tm = min(_round_up(max(M, _SUBLANE), _SUBLANE), 1024)
    m_pad = _round_up(M, tm)
    x_pad = jnp.pad(x2d, ((0, m_pad - M), (0, in_pad - in_dim)))

    # Cost estimate from TRUE dims / dtypes (scheduler hint only).
    flops = sum(2 * M * ki * ni for (ki, ni) in meta["true_layer_dims"])
    bytes_accessed = (x2d.size * x2d.dtype.itemsize
                      + w_stack.size * w_stack.dtype.itemsize
                      + b_stack.size * b_stack.dtype.itemsize
                      + M * out_dim * x.dtype.itemsize)

    # Explicit scoped-VMEM budget from actual buffer sizes (+25% headroom):
    #   x block x2 buffers, out block x2 buffers, weight/bias stack x1 buffer.
    vmem_bytes = (2 * tm * in_pad * x_pad.dtype.itemsize
                  + 2 * tm * out_pad * x.dtype.itemsize
                  + w_stack.size * w_stack.dtype.itemsize
                  + b_stack.size * b_stack.dtype.itemsize)
    vmem_limit = min(int(vmem_bytes * 1.25) + (2 << 20), 60 * 1024 * 1024)

    kernel = functools.partial(_fused_mlp_kernel, layer_dims=layer_dims)
    out = pl.pallas_call(
        kernel,
        out_shape=jax.ShapeDtypeStruct((m_pad, out_pad), x.dtype),
        grid=(m_pad // tm,),
        in_specs=[
            pl.BlockSpec((tm, in_pad), lambda i: (i, 0)),
            # Weights/biases: same block every grid step -> VMEM-resident;
            # Buffered(1) because a constant index_map needs no double buffer.
            pl.BlockSpec((num_layers, kmax, nmax), lambda i: (0, 0, 0),
                         pipeline_mode=pl.Buffered(1)),
            pl.BlockSpec((num_layers, 1, nmax), lambda i: (0, 0, 0),
                         pipeline_mode=pl.Buffered(1)),
        ],
        out_specs=pl.BlockSpec((tm, out_pad), lambda i: (i, 0)),
        compiler_params=pltpu.CompilerParams(
            dimension_semantics=("parallel",),
            vmem_limit_bytes=vmem_limit),
        cost_estimate=pl.CostEstimate(
            flops=flops, transcendentals=0, bytes_accessed=bytes_accessed),
    )(x_pad, w_stack, b_stack)

    out = out[:M, :out_dim]
    return out.reshape(*lead_shape, out_dim)


def mlp_reference_f32(x, params):
    num_layers = len(params)
    for i, (w_t, b) in enumerate(params):
        x = x @ w_t + b
        if i < num_layers - 1:
            x = jnp.maximum(x, 0.0)
    return x


def mlp_reference_bf16(x, params):
    """Reference with the same bf16-operand / f32-accumulate numerics."""
    num_layers = len(params)
    for i, (w_t, b) in enumerate(params):
        x = jnp.dot(x.astype(jnp.bfloat16), w_t.astype(jnp.bfloat16),
                    preferred_element_type=jnp.float32) + b
        if i < num_layers - 1:
            x = jnp.maximum(x, 0.0)
    return x


if __name__ == "__main__":
    key = jax.random.PRNGKey(0)
    k_x, k_p = jax.random.split(key)

    # Small shapes consistent with how STRobustNet uses MLP (token features):
    # x: (batch=2, seq=8, input_dim=32), hidden_dim=32, output_dim=4, L=3.
    batch, seq, input_dim = 2, 8, 32
    hidden_dim, output_dim, num_layers = 32, 4, 3

    x = jax.random.normal(k_x, (batch, seq, input_dim), jnp.float32)
    params = init_mlp_params(k_p, input_dim, hidden_dim, output_dim, num_layers)

    # One-time packing (hoisted out of the forward path).
    w_stack, b_stack, meta = prepare_mlp_params(params)

    out = mlp_forward(x, w_stack, b_stack, meta)
    out = jax.block_until_ready(out)

    assert out.shape == (batch, seq, output_dim), out.shape
    # Tight check vs a reference with matching bf16/f32 numerics.
    ref_bf16 = mlp_reference_bf16(x, params)
    assert jnp.allclose(out, ref_bf16, atol=1e-3, rtol=1e-3), "mismatch vs bf16 ref"
    # Loose sanity check vs the pure-f32 module semantics (bf16 MXU rounding).
    ref_f32 = mlp_reference_f32(x, params)
    assert jnp.allclose(out, ref_f32, atol=5e-2, rtol=5e-2), "mismatch vs f32 ref"

    print("KERNEL_OK")
</pallas_src>

<mosaic_0001>
module attributes {stable_mosaic.version = 11 : i64} {
  func.func @_fused_mlp_kernel(%arg0: i32, %arg1: memref<16x128xf32, #tpu.memory_space<vmem>>, %arg2: memref<3x128x128xbf16, #tpu.memory_space<vmem>>, %arg3: memref<3x1x128xf32, #tpu.memory_space<vmem>>, %arg4: memref<16x128xf32, #tpu.memory_space<vmem>>) attributes {dimension_semantics = [#tpu.dimension_semantics<parallel>], iteration_bounds = array<i64: 1>, scalar_prefetch = 0 : i64, scratch_operands = 0 : i64, tpu.core_type = #tpu.core_type<tc>, window_params = [{transform_indices = @transform_0, window_bounds = array<i64: 16, 128>}, {pipeline_mode = #tpu.pipeline_mode<synchronous>, transform_indices = @transform_1, window_bounds = array<i64: 3, 128, 128>}, {pipeline_mode = #tpu.pipeline_mode<synchronous>, transform_indices = @transform_2, window_bounds = array<i64: 3, 1, 128>}, {transform_indices = @transform_3, window_bounds = array<i64: 16, 128>}]} {
    %c0 = arith.constant 0 : index
    %c0_0 = arith.constant 0 : index
    %0 = vector.load %arg1[%c0, %c0_0] : memref<16x128xf32, #tpu.memory_space<vmem>>, vector<16x128xf32>
    %c0_1 = arith.constant 0 : index
    %c0_2 = arith.constant 0 : index
    %c0_3 = arith.constant 0 : index
    %1 = vector.load %arg2[%c0_1, %c0_2, %c0_3] : memref<3x128x128xbf16, #tpu.memory_space<vmem>>, vector<1x128x128xbf16>
    %2 = vector.shape_cast %1 : vector<1x128x128xbf16> to vector<128x128xbf16>
    %3 = arith.truncf %0 : vector<16x128xf32> to vector<16x128xbf16>
    %cst = arith.constant dense<0.000000e+00> : vector<16x128xf32>
    %4 = tpu.matmul %3, %2, %cst {dimension_numbers = #tpu.dot_dimension_numbers<[1], [0], [0], [1], [0, 0, 1, 1], [], []>} : vector<16x128xbf16>, vector<128x128xbf16>, vector<16x128xf32> -> vector<16x128xf32>
    %c0_4 = arith.constant 0 : index
    %c0_5 = arith.constant 0 : index
    %c0_6 = arith.constant 0 : index
    %5 = vector.load %arg3[%c0_4, %c0_5, %c0_6] : memref<3x1x128xf32, #tpu.memory_space<vmem>>, vector<1x1x128xf32>
    %6 = vector.shape_cast %5 : vector<1x1x128xf32> to vector<1x128xf32>
    %7 = vector.broadcast %6 : vector<1x128xf32> to vector<16x128xf32>
    %8 = arith.addf %4, %7 : vector<16x128xf32>
    %cst_7 = arith.constant 0.000000e+00 : f32
    %9 = vector.broadcast %cst_7 : f32 to vector<16x128xf32>
    %10 = arith.maximumf %8, %9 : vector<16x128xf32>
    %c1 = arith.constant 1 : index
    %c0_8 = arith.constant 0 : index
    %c0_9 = arith.constant 0 : index
    %11 = vector.load %arg2[%c1, %c0_8, %c0_9] : memref<3x128x128xbf16, #tpu.memory_space<vmem>>, vector<1x128x128xbf16>
    %12 = vector.shape_cast %11 : vector<1x128x128xbf16> to vector<128x128xbf16>
    %13 = arith.truncf %10 : vector<16x128xf32> to vector<16x128xbf16>
    %cst_10 = arith.constant dense<0.000000e+00> : vector<16x128xf32>
    %14 = tpu.matmul %13, %12, %cst_10 {dimension_numbers = #tpu.dot_dimension_numbers<[1], [0], [0], [1], [0, 0, 1, 1], [], []>} : vector<16x128xbf16>, vector<128x128xbf16>, vector<16x128xf32> -> vector<16x128xf32>
    %c1_11 = arith.constant 1 : index
    %c0_12 = arith.constant 0 : index
    %c0_13 = arith.constant 0 : index
    %15 = vector.load %arg3[%c1_11, %c0_12, %c0_13] : memref<3x1x128xf32, #tpu.memory_space<vmem>>, vector<1x1x128xf32>
    %16 = vector.shape_cast %15 : vector<1x1x128xf32> to vector<1x128xf32>
    %17 = vector.broadcast %16 : vector<1x128xf32> to vector<16x128xf32>
    %18 = arith.addf %14, %17 : vector<16x128xf32>
    %cst_14 = arith.constant 0.000000e+00 : f32
    %19 = vector.broadcast %cst_14 : f32 to vector<16x128xf32>
    %20 = arith.maximumf %18, %19 : vector<16x128xf32>
    %c2 = arith.constant 2 : index
    %c0_15 = arith.constant 0 : index
    %c0_16 = arith.constant 0 : index
    %21 = vector.load %arg2[%c2, %c0_15, %c0_16] : memref<3x128x128xbf16, #tpu.memory_space<vmem>>, vector<1x128x128xbf16>
    %22 = vector.shape_cast %21 : vector<1x128x128xbf16> to vector<128x128xbf16>
    %23 = arith.truncf %20 : vector<16x128xf32> to vector<16x128xbf16>
    %cst_17 = arith.constant dense<0.000000e+00> : vector<16x128xf32>
    %24 = tpu.matmul %23, %22, %cst_17 {dimension_numbers = #tpu.dot_dimension_numbers<[1], [0], [0], [1], [0, 0, 1, 1], [], []>} : vector<16x128xbf16>, vector<128x128xbf16>, vector<16x128xf32> -> vector<16x128xf32>
    %c2_18 = arith.constant 2 : index
    %c0_19 = arith.constant 0 : index
    %c0_20 = arith.constant 0 : index
    %25 = vector.load %arg3[%c2_18, %c0_19, %c0_20] : memref<3x1x128xf32, #tpu.memory_space<vmem>>, vector<1x1x128xf32>
    %26 = vector.shape_cast %25 : vector<1x1x128xf32> to vector<1x128xf32>
    %27 = vector.broadcast %26 : vector<1x128xf32> to vector<16x128xf32>
    %28 = arith.addf %24, %27 : vector<16x128xf32>
    %c0_21 = arith.constant 0 : index
    %c0_22 = arith.constant 0 : index
    %29 = vector.load %arg4[%c0_21, %c0_22] : memref<16x128xf32, #tpu.memory_space<vmem>>, vector<16x128xf32>
    tpu.vector_store %arg4[%c0_21, %c0_22], %28 {strides = array<i32>} : memref<16x128xf32, #tpu.memory_space<vmem>>, vector<16x128xf32>,
    return
  }
  func.func @transform_0(%arg0: i32) -> (i32, i32) {
    %c0_i32 = arith.constant 0 : i32
    %c0_i32_0 = arith.constant 0 : i32
    return %arg0, %c0_i32 : i32, i32
  }
  func.func @transform_1(%arg0: i32) -> (i32, i32, i32) {
    %c0_i32 = arith.constant 0 : i32
    %c0_i32_0 = arith.constant 0 : i32
    %c0_i32_1 = arith.constant 0 : i32
    %c0_i32_2 = arith.constant 0 : i32
    return %c0_i32, %c0_i32_0, %c0_i32_1 : i32, i32, i32
  }
  func.func @transform_2(%arg0: i32) -> (i32, i32, i32) {
    %c0_i32 = arith.constant 0 : i32
    %c0_i32_0 = arith.constant 0 : i32
    %c0_i32_1 = arith.constant 0 : i32
    %c0_i32_2 = arith.constant 0 : i32
    return %c0_i32, %c0_i32_0, %c0_i32_1 : i32, i32, i32
  }
  func.func @transform_3(%arg0: i32) -> (i32, i32) {
    %c0_i32 = arith.constant 0 : i32
    %c0_i32_0 = arith.constant 0 : i32
    return %arg0, %c0_i32 : i32, i32
  }
}

</mosaic_0001>

<bundles_post_ra>
// kernel: tpu_custom_call.1
= control target key start
LH: loop header
LB: loop body
LE: loop exit
PB: predicated region body
PF: predicated region fallthrough
CT: control target
= control target key end

     0   :  { %8 = vsyncpa [#allocation3], 0  ;;  %s744_s0 = inlined_call_operand.hbm [shape: f32[16,128], index: 0, kind: input, shape index: {}]   ;;  %s745_s1 = inlined_call_operand.hbm [shape: bf16[3,128,128], index: 1, kind: input, shape index: {}]   ;;  %s746_s2 = inlined_call_operand.vmem [shape: f32[3,1,128], index: 2, kind: input, shape index: {}]   ;;  %s747_s3 = inlined_call_operand.hbm [shape: f32[16,128], index: 3, kind: output, shape index: {}]  }
   0x1   :  { %9 = vsyncpa [#allocation6], 0 }
   0x2   :  { %10 = vsyncpa [#allocation4], 0  ;;  %s634_s12 = smov [#allocation2]   ;;  %s562_s16 = scalar_lea.hbm %s744_s0, 256 }
   0x3   :  { %s16_s13 = sshll.u32 %s634_s12, 4  ;;  %p563_p0 = scmp.ne.s32.totalorder %s744_s0, %s562_s16  ;;  %s17_s13 = int_to_ptr.vmem [resolvable:$true] %s16_s13 }
   0x4   :  { %p566_p1 = scmp.lt.u32.totalorder %s562_s16, %s744_s0 }
   0x6   :  { %p568_p2 = pnand %p566_p1, %p563_p0 }
   0x8   :  { %571 = shalt.err (!%p568_p2)
}
   0x9   :  { %s572_s21 = scalar_lea.vmem %s17_s13, 256  ;;  %p577_p4 = scmp.lt.s32.totalorder %s17_s13, %s17_s13 }
   0xa   :  { %p573_p3 = scmp.ne.s32.totalorder %s17_s13, %s572_s21  ;;  %p578_p5 = scmp.lt.s32.totalorder %s572_s21, %s572_s21 }
   0xc   :  { %p579_p6 = por %p578_p5, %p577_p4 }
   0xe   :  { %p580_p7 = pnand %p579_p6, %p573_p3 }
  0x10   :  { %583 = shalt.err (!%p580_p7)
}
  0x11   :  { %s635_s22 = smov 128   ;;  %s636_s23 = smov 8  }
  0x12   :  { %22 = dma.hbm_to_vmem [thread:$0]  %s744_s0, 256, %s17_s13, [#allocation3], %s635_s22, %s635_s22, %s636_s23  }
  0x13   :  { %s637_s26 = smov [#allocation5]   ;;  %s584_s30 = scalar_lea.hbm %s745_s1, 3072 }
  0x14   :  { %s28_s27 = sshll.u32 %s637_s26, 4  ;;  %p585_p8 = scmp.ne.s32.totalorder %s745_s1, %s584_s30  ;;  %s29_s27 = int_to_ptr.vmem [resolvable:$true] %s28_s27 }
  0x15   :  { %p588_p9 = scmp.lt.u32.totalorder %s584_s30, %s745_s1 }
  0x17   :  { %p590_p10 = pnand %p588_p9, %p585_p8 }
  0x19   :  { %593 = shalt.err (!%p590_p10)
}
  0x1a   :  { %s594_s8 = scalar_lea.vmem %s29_s27, 3072  ;;  %p599_p12 = scmp.lt.s32.totalorder %s29_s27, %s29_s27 }
  0x1b   :  { %p595_p11 = scmp.ne.s32.totalorder %s29_s27, %s594_s8  ;;  %p600_p13 = scmp.lt.s32.totalorder %s594_s8, %s594_s8 }
  0x1d   :  { %p601_p0 = por %p600_p13, %p599_p12 }
  0x1f   :  { %p602_p1 = pnand %p601_p0, %p595_p11 }
  0x21   :  { %605 = shalt.err (!%p602_p1)
}
  0x22   :  { %s638_s0 = smov 64   ;;  %s639_s9 = smov 4  }
  0x23   :  { %34 = dma.hbm_to_vmem [thread:$0]  %s745_s1, 3072, %s29_s27, [#allocation6], %s638_s0, %s638_s0, %s639_s9  }
  0x24   :  { %628 = dma.done.wait [#allocation3], 256  }
  0x25   :  { %629 = vsyncadd [#allocation3], 4294967040 }
  0x26   :  { %630 = dma.done.wait [#allocation6], 3072  }
  0x27   :  { %631 = vsyncadd [#allocation6], 4294964224  ;;  %v640_v0 = vmov 0.0   ;;  %vm641_vm0 = vmmov 0   ;;  %v538_v1 = vld [vmem:[#allocation5] sm:$0xff]   ;;  %v539_v2 = vld [vmem:[#allocation5 + $0x8] sm:$0xff]  }
  0x28   :  { %469 = vmatprep.subr.bf16.mxu0 %v640_v0  ;;  %485 = vmatprep.mubr.msk.bf16.mxu0 %vm641_vm0, %v640_v0  ;;  %v540_v3 = vld [vmem:[#allocation5 + $0x10] sm:$0xff]   ;;  %v546_v4 = vld [vmem:[#allocation5 + $0x40] sm:$0xff]   ;;  %v541_v5 = vld [vmem:[#allocation5 + $0x18] sm:$0xff]   ;;  %s642_s17 = smov [#allocation7]  }
  0x29   :  { %489 = vmatprep.subr.bf16.mxu1 %v640_v0  ;;  %505 = vmatprep.mubr.msk.bf16.mxu1 %vm641_vm0, %v640_v0  ;;  %v547_v6 = vld [vmem:[#allocation5 + $0x48] sm:$0xff]   ;;  %v542_v7 = vld [vmem:[#allocation5 + $0x20] sm:$0xff]   ;;  %v548_v8 = vld [vmem:[#allocation5 + $0x50] sm:$0xff]   ;;  %s400_s18 = sshll.u32 %s642_s17, 4  ;;  %s401_s18 = int_to_ptr.vmem [resolvable:$true] %s400_s18 }
  0x2a   :  { %470 = vmatpush3.bf16.msra.mxu0 %v538_v1  ;;  %490 = vmatpush3.bf16.msra.mxu1 %v546_v4  ;;  %v543_v9 = vld [vmem:[#allocation5 + $0x28] sm:$0xff]   ;;  %v549_v10 = vld [vmem:[#allocation5 + $0x58] sm:$0xff]   ;;  %v544_v11 = vld [vmem:[#allocation5 + $0x30] sm:$0xff]   ;;  %s606_s19 = scalar_lea.vmem %s401_s18, 256  ;;  %p611_p3 = scmp.lt.s32.totalorder %s401_s18, %s401_s18 }
  0x2b   :  { %471 = vmatprep.subr.bf16.mxu0 %v640_v0  ;;  %491 = vmatprep.subr.bf16.mxu1 %v640_v0  ;;  %v550_v12 = vld [vmem:[#allocation5 + $0x60] sm:$0xff]   ;;  %v545_v13 = vld [vmem:[#allocation5 + $0x38] sm:$0xff]   ;;  %v44_v14 = vld [vmem:[#allocation2] sm:$0xff]  ;;  %p607_p2 = scmp.ne.s32.totalorder %s401_s18, %s606_s19  ;;  %p612_p4 = scmp.lt.s32.totalorder %s606_s19, %s606_s19 }
  0x2c   :  { %v45_v15 = vld [vmem:[#allocation2 + $0x8] sm:$0xff]  ;;  %v551_v16 = vld [vmem:[#allocation5 + $0x68] sm:$0xff]   ;;  %v552_v18 = vld [vmem:[#allocation5 + $0x70] sm:$0xff]  }
  0x2d   :  { %v62_v17 = vpack.c.bf16 %v45_v15, %v44_v14  ;;  %v553_v19 = vld [vmem:[#allocation5 + $0x78] sm:$0xff]   ;;  %v554_v20 = vld [vmem:[#allocation5 + $0x80] sm:$0xff]   ;;  %v555_v21 = vld [vmem:[#allocation5 + $0x88] sm:$0xff]   ;;  %p613_p5 = por %p612_p4, %p611_p3 }
  0x2e   :  { %472 = vmatpush3.bf16.msra.mxu0 %v539_v2  ;;  %492 = vmatpush3.bf16.msra.mxu1 %v547_v6  ;;  %v556_v22 = vld [vmem:[#allocation5 + $0x90] sm:$0xff]   ;;  %v557_v23 = vld [vmem:[#allocation5 + $0x98] sm:$0xff]   ;;  %v558_v24 = vld [vmem:[#allocation5 + $0xa0] sm:$0xff]  }
  0x2f   :  { %473 = vmatprep.subr.bf16.mxu0 %v640_v0  ;;  %493 = vmatprep.subr.bf16.mxu1 %v640_v0  ;;  %v559_v25 = vld [vmem:[#allocation5 + $0xa8] sm:$0xff]   ;;  %v413_v26 = vld [vmem:[%s746_s2] ss:$0 sm:$0xff]  ;;  %v561_v37 = vld [vmem:[#allocation5 + $0xb8] sm:$0xff]   ;;  %p614_p6 = pnand %p613_p5, %p607_p2 }
  0x30   :  { %v560_v36 = vld [vmem:[#allocation5 + $0xb0] sm:$0xff]  }
  0x31   :  { %v423_v38 = vld [vmem:[%s746_s2 + $0x1] ss:$0 sm:$0xff]  ;;  %v433_v48 = vld [vmem:[%s746_s2 + $0x2] ss:$0 sm:$0xff] }
  0x32   :  { %474 = vmatpush3.bf16.msra.mxu0 %v540_v3  ;;  %494 = vmatpush3.bf16.msra.mxu1 %v548_v8 }
  0x33   :  { %475 = vmatprep.subr.bf16.mxu0 %v640_v0  ;;  %495 = vmatprep.subr.bf16.mxu1 %v640_v0 }
  0x36   :  { %476 = vmatpush3.bf16.msra.mxu0 %v541_v5  ;;  %496 = vmatpush3.bf16.msra.mxu1 %v549_v10 }
  0x37   :  { %477 = vmatprep.subr.bf16.mxu0 %v640_v0  ;;  %497 = vmatprep.subr.bf16.mxu1 %v640_v0 }
  0x3a   :  { %478 = vmatpush3.bf16.msra.mxu0 %v542_v7  ;;  %498 = vmatpush3.bf16.msra.mxu1 %v550_v12 }
  0x3b   :  { %479 = vmatprep.subr.bf16.mxu0 %v640_v0  ;;  %499 = vmatprep.subr.bf16.mxu1 %v640_v0 }
  0x3e   :  { %480 = vmatpush3.bf16.msra.mxu0 %v543_v9  ;;  %500 = vmatpush3.bf16.msra.mxu1 %v551_v16 }
  0x3f   :  { %481 = vmatprep.subr.bf16.mxu0 %v640_v0  ;;  %501 = vmatprep.subr.bf16.mxu1 %v640_v0 }
  0x42   :  { %482 = vmatpush3.bf16.msra.mxu0 %v544_v11  ;;  %502 = vmatpush3.bf16.msra.mxu1 %v552_v18 }
  0x43   :  { %483 = vmatprep.subr.bf16.mxu0 %v640_v0  ;;  %503 = vmatprep.subr.bf16.mxu1 %v640_v0 }
  0x46   :  { %484 = vmatpush3.bf16.msra.mxu0 %v545_v13  ;;  %504 = vmatpush3.bf16.msra.mxu1 %v553_v19 }
  0x47   :  { %509 = vmatprep.subr.bf16.mxu0 %v640_v0 }
  0x49   :  { %486 = vmatmul.mubr.bf16.vlgmr.msra.gmra.mrb[0].mxu0 %v62_v17 }
  0x4a   :  { %525 = vmatprep.mubr.msk.bf16.mxu0 %vm641_vm0, %v640_v0  ;;  %510 = vmatpush3.bf16.msra.mxu0 %v554_v20 }
  0x4b   :  { %511 = vmatprep.subr.bf16.mxu0 %v640_v0 }
  0x4e   :  { %512 = vmatpush3.bf16.msra.mxu0 %v555_v21 }
  0x4f   :  { %513 = vmatprep.subr.bf16.mxu0 %v640_v0 }
  0x52   :  { %514 = vmatpush3.bf16.msra.mxu0 %v556_v22 }
  0x53   :  { %515 = vmatprep.subr.bf16.mxu0 %v640_v0 }
  0x56   :  { %516 = vmatpush3.bf16.msra.mxu0 %v557_v23 }
  0x57   :  { %517 = vmatprep.subr.bf16.mxu0 %v640_v0 }
  0x5a   :  { %518 = vmatpush3.bf16.msra.mxu0 %v558_v24 }
  0x5b   :  { %519 = vmatprep.subr.bf16.mxu0 %v640_v0 }
  0x5e   :  { %520 = vmatpush3.bf16.msra.mxu0 %v559_v25 }
  0x5f   :  { %521 = vmatprep.subr.bf16.mxu0 %v640_v0 }
  0x62   :  { %522 = vmatpush3.bf16.msra.mxu0 %v560_v36 }
  0x63   :  { %523 = vmatprep.subr.bf16.mxu0 %v640_v0 }
  0x66   :  { %524 = vmatpush3.bf16.msra.mxu0 %v561_v37 }
 0x11c   :  { %v152_v27 = vpop.f32.mrb[0].mxu0 }
 0x11d   :  { %v153_v28 = vadd.f32 %v413_v26, %v152_v27  ;;  %v487_v29 = vpop.f32.mrb[1].mxu0 }
 0x11e   :  { %v155_v30 = vpop.f32.mrb[2].mxu0 }
 0x11f   :  { %v156_v31 = vadd.f32 %v413_v26, %v155_v30  ;;  %v488_v32 = vpop.f32.mrb[3].mxu0  ;;  %v159_v33 = vmax.f32 %v153_v28, 0.0 }
 0x121   :  { %v160_v34 = vmax.f32 %v156_v31, 0.0 }
 0x123   :  { %v178_v35 = vpack.c.bf16 %v160_v34, %v159_v33 }
 0x125   :  { %506 = vmatmul.mubr.bf16.vlgmr.msra.gmra.mrb[0].mxu1 %v178_v35 }
 0x1f8   :  { %v269_v39 = vpop.f32.mrb[0].mxu1 }
 0x1f9   :  { %v270_v40 = vadd.f32 %v423_v38, %v269_v39  ;;  %v507_v41 = vpop.f32.mrb[1].mxu1 }
 0x1fa   :  { %v272_v42 = vpop.f32.mrb[2].mxu1 }
 0x1fb   :  { %v273_v43 = vadd.f32 %v423_v38, %v272_v42  ;;  %v508_v44 = vpop.f32.mrb[3].mxu1  ;;  %v276_v45 = vmax.f32 %v270_v40, 0.0 }
 0x1fd   :  { %v277_v46 = vmax.f32 %v273_v43, 0.0 }
 0x1ff   :  { %v295_v47 = vpack.c.bf16 %v277_v46, %v276_v45 }
 0x201   :  { %526 = vmatmul.mubr.bf16.vlgmr.msra.gmra.mrb[4].mxu0 %v295_v47 }
 0x2d4   :  { %v386_v49 = vpop.f32.mrb[4].mxu0 }
 0x2d5   :  { %v387_v50 = vadd.f32 %v433_v48, %v386_v49  ;;  %v527_v51 = vpop.f32.mrb[5].mxu0 }
 0x2d6   :  { %v389_v52 = vpop.f32.mrb[6].mxu0 }
 0x2d7   :  { %393 = vst [vmem:[#allocation7] sm:$0xff] %v387_v50  ;;  %v390_v53 = vadd.f32 %v433_v48, %v389_v52  ;;  %v528_v54 = vpop.f32.mrb[7].mxu0 }
 0x2d9   :  { %394 = vst [vmem:[#allocation7 + $0x8] sm:$0xff] %v390_v53 }
 0x2da   :  { %617 = shalt.err (!%p614_p6)
}
 0x2db   :  { %s618_s21 = scalar_lea.hbm %s747_s3, 256 }
 0x2dc   :  { %p619_p7 = scmp.ne.s32.totalorder %s747_s3, %s618_s21  ;;  %p622_p8 = scmp.lt.u32.totalorder %s618_s21, %s747_s3 }
 0x2de   :  { %p624_p9 = pnand %p622_p8, %p619_p7 }
 0x2e0   :  { %627 = shalt.err (!%p624_p9)
}
 0x2e1   :  { %406 = dma.vmem_to_hbm [thread:$0]  %s401_s18, 256, %s747_s3, [#allocation4], %s635_s22, %s635_s22, %s636_s23  }
 0x2e2   :  { %632 = dma.done.wait [#allocation4], 256  }
 0x2e3   :  { %633 = vsyncadd [#allocation4], 4294967040 }
 0x2e4   :  { %410 = vsyncpa [#allocation3], 1 }
 0x2e5   :  { %411 = vsyncpa [#allocation6], 1 }
 0x2e6   :  { %412 = vsyncpa [#allocation4], 1 }

</bundles_post_ra>
